<compile_context>
chip_gen: v5e
topology: v5e:2x2
jax: 0.10.0
libtpu: 0.0.40
codegen_flags: <defaults>
</compile_context>

<pallas_src>
import functools

import jax
import jax.numpy as jnp
from jax.experimental import pallas as pl
from jax.experimental.pallas import tpu as pltpu


def _mlp_residual_ln_kernel(x_ref, res_ref, w1_ref, b1_ref, w2_ref, b2_ref,
                            gamma_ref, beta_ref, o_ref, *, eps, matmul_dtype):
    # x_ref:  (tm, dmodel)   rows of hidden_states
    # res_ref:(tm, dmodel)   rows of input_tensor (residual)
    # w1_ref: (dmodel, dff)  bf16 resident, b1_ref: (1, dff) f32
    # w2_ref: (dff, dmodel)  bf16 resident, b2_ref: (1, dmodel) f32
    # gamma_ref/beta_ref: (1, dmodel) f32

    # MXU path: narrow (bf16) operands, f32 accumulation.  Only the small
    # (tm, dmodel) activation tile is cast here, never the resident weights.
    x = x_ref[...].astype(matmul_dtype)

    h = jnp.dot(x, w1_ref[...], preferred_element_type=jnp.float32)
    h = jnp.maximum(h + b1_ref[...], 0.0)

    y = jnp.dot(h.astype(matmul_dtype), w2_ref[...],
                preferred_element_type=jnp.float32)
    y = y + b2_ref[...]

    # TODO(synk): dropout is identity in eval mode; training-mode PRNG masking
    # (pltpu.prng_seed / prng_random_bits) intentionally omitted.

    z = y + res_ref[...].astype(jnp.float32)

    # LayerNorm over the feature (lane) axis: two-pass variance, rsqrt on EUP.
    mean = jnp.mean(z, axis=-1, keepdims=True)
    zc = z - mean
    var = jnp.mean(zc * zc, axis=-1, keepdims=True)
    zn = zc * jax.lax.rsqrt(var + eps)
    o_ref[...] = (zn * gamma_ref[...] + beta_ref[...]).astype(o_ref.dtype)


def _round_up(x, m):
    return ((x + m - 1) // m) * m


def _pick_row_tile(n_rows, tm):
    # Keep at least 2 grid steps when possible so the "parallel" row axis can
    # shard across v7x's two TensorCores; never go below the 8-row sublane
    # granule.  For realistic ViT shapes this leaves tm at its large default.
    half = _round_up(pl.cdiv(n_rows, 2), 8)
    return max(8, min(tm, half))


def _default_vmem_limit(tm, dmodel, dff, w_itemsize, x_itemsize):
    """Footprint estimate -> scoped VMEM limit, capped under physical VMEM."""
    weights = 2 * (dmodel * dff + dff * dmodel) * w_itemsize   # double-buffered W1+W2
    streams = 2 * 3 * tm * dmodel * x_itemsize                 # x / res / out tiles
    interm = tm * dff * 4 + 4 * tm * dmodel * 4                # h + f32 temporaries
    small = 2 * 2 * (dff + 3 * dmodel) * 4                     # biases / LN affine
    est = weights + streams + interm + small
    try:
        vmem_cap = pltpu.get_tpu_info().vmem_capacity_bytes
    except Exception:
        vmem_cap = 128 * 1024 * 1024                           # conservative fallback
    return int(min(max(int(1.5 * est), 32 * 1024 * 1024), 0.75 * vmem_cap))


def attention_output(hidden_states, input_tensor, params, *, eps=1e-6, tm=256,
                     weight_dtype=jnp.bfloat16, vmem_limit_bytes=None):
    """hidden_states, input_tensor: [B, S, dmodel]. Returns [B, S, dmodel]."""
    w1, b1, w2, b2 = params["w1"], params["b1"], params["w2"], params["b2"]
    gamma, beta = params["gamma"], params["beta"]

    B, S, dmodel = hidden_states.shape
    dff = w1.shape[1]
    N = B * S

    tm_eff = _pick_row_tile(N, tm)
    grid_rows = pl.cdiv(N, tm_eff)
    n_pad = grid_rows * tm_eff

    x2 = hidden_states.reshape(N, dmodel)
    r2 = input_tensor.reshape(N, dmodel)
    if n_pad != N:
        x2 = jnp.pad(x2, ((0, n_pad - N), (0, 0)))
        r2 = jnp.pad(r2, ((0, n_pad - N), (0, 0)))

    # Cast the big weight matrices to the MXU operand dtype once, outside the
    # kernel (halves weight DMA bytes + VMEM residency).  Biases and the
    # LayerNorm affine stay in f32 for the accumulate / epilogue path.
    w1c = w1.astype(weight_dtype)
    w2c = w2.astype(weight_dtype)
    b1_2 = b1.reshape(1, dff).astype(jnp.float32)
    b2_2 = b2.reshape(1, dmodel).astype(jnp.float32)
    g2 = gamma.reshape(1, dmodel).astype(jnp.float32)
    be2 = beta.reshape(1, dmodel).astype(jnp.float32)

    if vmem_limit_bytes is None:
        vmem_limit_bytes = _default_vmem_limit(
            tm_eff, dmodel, dff,
            jnp.dtype(weight_dtype).itemsize, x2.dtype.itemsize)

    kernel = functools.partial(_mlp_residual_ln_kernel, eps=eps,
                               matmul_dtype=jnp.dtype(weight_dtype))

    # TODO(synk): for very large dff on v7x (bf16 weights > ~48 MiB resident)
    # add a second "arbitrary" grid axis over dff with a VMEM f32 accumulator.
    out = pl.pallas_call(
        kernel,
        out_shape=jax.ShapeDtypeStruct((n_pad, dmodel), hidden_states.dtype),
        grid_spec=pltpu.PrefetchScalarGridSpec(
            num_scalar_prefetch=0,
            grid=(grid_rows,),
            in_specs=[
                # streamed row tiles (default double-buffering is sufficient;
                # bump to pipeline_mode=pl.Buffered(3) only if DMA is exposed)
                pl.BlockSpec((tm_eff, dmodel), lambda i: (i, 0)),   # x rows
                pl.BlockSpec((tm_eff, dmodel), lambda i: (i, 0)),   # residual rows
                # VMEM-resident weights / params (constant index maps)
                pl.BlockSpec((dmodel, dff), lambda i: (0, 0)),      # W1
                pl.BlockSpec((1, dff), lambda i: (0, 0)),           # b1
                pl.BlockSpec((dff, dmodel), lambda i: (0, 0)),      # W2
                pl.BlockSpec((1, dmodel), lambda i: (0, 0)),        # b2
                pl.BlockSpec((1, dmodel), lambda i: (0, 0)),        # gamma
                pl.BlockSpec((1, dmodel), lambda i: (0, 0)),        # beta
            ],
            out_specs=pl.BlockSpec((tm_eff, dmodel), lambda i: (i, 0)),
        ),
        compiler_params=pltpu.CompilerParams(
            dimension_semantics=("parallel",),
            vmem_limit_bytes=vmem_limit_bytes),
    )(x2, r2, w1c, b1_2, w2c, b2_2, g2, be2)

    if n_pad != N:
        out = out[:N]
    return out.reshape(B, S, dmodel)


def init_params(key, dmodel, dff, dtype=jnp.float32):
    """Deterministic init mimicking torch.nn.Linear defaults (U(-1/sqrt(in), 1/sqrt(in)))."""
    k1, k2, k3, k4 = jax.random.split(key, 4)
    lim1 = 1.0 / (dmodel ** 0.5)
    lim2 = 1.0 / (dff ** 0.5)
    return {
        "w1": jax.random.uniform(k1, (dmodel, dff), dtype, -lim1, lim1),
        "b1": jax.random.uniform(k2, (dff,), dtype, -lim1, lim1),
        "w2": jax.random.uniform(k3, (dff, dmodel), dtype, -lim2, lim2),
        "b2": jax.random.uniform(k4, (dmodel,), dtype, -lim2, lim2),
        "gamma": jnp.ones((dmodel,), dtype),
        "beta": jnp.zeros((dmodel,), dtype),
    }


def reference(hidden_states, input_tensor, params, eps=1e-6,
              weight_dtype=jnp.bfloat16):
    # Mirrors the kernel's mixed precision: bf16 matmul operands, f32 accumulate,
    # f32 bias/residual/LayerNorm.
    w1 = params["w1"].astype(weight_dtype).astype(jnp.float32)
    w2 = params["w2"].astype(weight_dtype).astype(jnp.float32)
    x = hidden_states.astype(weight_dtype).astype(jnp.float32)
    h = jnp.maximum(x @ w1 + params["b1"], 0.0)
    y = h.astype(weight_dtype).astype(jnp.float32) @ w2 + params["b2"]
    z = y + input_tensor
    mean = jnp.mean(z, axis=-1, keepdims=True)
    var = jnp.mean((z - mean) ** 2, axis=-1, keepdims=True)
    return (z - mean) / jnp.sqrt(var + eps) * params["gamma"] + params["beta"]


if __name__ == "__main__":
    B, S, dmodel, dff = 2, 8, 32, 64
    key = jax.random.PRNGKey(0)
    kx, kr, kp = jax.random.split(key, 3)

    hidden_states = jax.random.normal(kx, (B, S, dmodel), jnp.float32)
    input_tensor = jax.random.normal(kr, (B, S, dmodel), jnp.float32)
    params = init_params(kp, dmodel, dff)

    out = attention_output(hidden_states, input_tensor, params)
    out = jax.block_until_ready(out)

    ref = reference(hidden_states, input_tensor, params)
    assert out.shape == (B, S, dmodel)
    assert jnp.allclose(out, ref, atol=2e-2, rtol=2e-2), "mismatch vs reference"

    # Second shape where B*S is not a multiple of the row tile -> exercises
    # the cdiv + padding path that replaced the divisibility assert.
    B2, S2 = 1, 5
    hs2 = jax.random.normal(kx, (B2, S2, dmodel), jnp.float32)
    it2 = jax.random.normal(kr, (B2, S2, dmodel), jnp.float32)
    out2 = jax.block_until_ready(attention_output(hs2, it2, params))
    ref2 = reference(hs2, it2, params)
    assert out2.shape == (B2, S2, dmodel)
    assert jnp.allclose(out2, ref2, atol=2e-2, rtol=2e-2), "mismatch (padded path)"

    print("KERNEL_OK")
</pallas_src>

<mosaic_0001>
module attributes {stable_mosaic.version = 11 : i64} {
  func.func @_mlp_residual_ln_kernel(%arg0: i32, %arg1: memref<8x32xf32, #tpu.memory_space<vmem>>, %arg2: memref<8x32xf32, #tpu.memory_space<vmem>>, %arg3: memref<32x64xbf16, #tpu.memory_space<vmem>>, %arg4: memref<1x64xf32, #tpu.memory_space<vmem>>, %arg5: memref<64x32xbf16, #tpu.memory_space<vmem>>, %arg6: memref<1x32xf32, #tpu.memory_space<vmem>>, %arg7: memref<1x32xf32, #tpu.memory_space<vmem>>, %arg8: memref<1x32xf32, #tpu.memory_space<vmem>>, %arg9: memref<8x32xf32, #tpu.memory_space<vmem>>) attributes {dimension_semantics = [#tpu.dimension_semantics<parallel>], iteration_bounds = array<i64: 2>, scalar_prefetch = 0 : i64, scratch_operands = 0 : i64, tpu.core_type = #tpu.core_type<tc>, window_params = [{transform_indices = @transform_0, window_bounds = array<i64: 8, 32>}, {transform_indices = @transform_1, window_bounds = array<i64: 8, 32>}, {pipeline_mode = #tpu.pipeline_mode<synchronous>, transform_indices = @transform_2, window_bounds = array<i64: 32, 64>}, {pipeline_mode = #tpu.pipeline_mode<synchronous>, transform_indices = @transform_3, window_bounds = array<i64: 1, 64>}, {pipeline_mode = #tpu.pipeline_mode<synchronous>, transform_indices = @transform_4, window_bounds = array<i64: 64, 32>}, {pipeline_mode = #tpu.pipeline_mode<synchronous>, transform_indices = @transform_5, window_bounds = array<i64: 1, 32>}, {pipeline_mode = #tpu.pipeline_mode<synchronous>, transform_indices = @transform_6, window_bounds = array<i64: 1, 32>}, {pipeline_mode = #tpu.pipeline_mode<synchronous>, transform_indices = @transform_7, window_bounds = array<i64: 1, 32>}, {transform_indices = @transform_8, window_bounds = array<i64: 8, 32>}]} {
    %c0 = arith.constant 0 : index
    %c0_0 = arith.constant 0 : index
    %0 = vector.load %arg1[%c0, %c0_0] : memref<8x32xf32, #tpu.memory_space<vmem>>, vector<8x32xf32>
    %1 = arith.truncf %0 : vector<8x32xf32> to vector<8x32xbf16>
    %c0_1 = arith.constant 0 : index
    %c0_2 = arith.constant 0 : index
    %2 = vector.load %arg3[%c0_1, %c0_2] : memref<32x64xbf16, #tpu.memory_space<vmem>>, vector<32x64xbf16>
    %cst = arith.constant dense<0.000000e+00> : vector<8x64xf32>
    %3 = tpu.matmul %1, %2, %cst {dimension_numbers = #tpu.dot_dimension_numbers<[1], [0], [0], [1], [0, 0, 1, 1], [], []>} : vector<8x32xbf16>, vector<32x64xbf16>, vector<8x64xf32> -> vector<8x64xf32>
    %c0_3 = arith.constant 0 : index
    %c0_4 = arith.constant 0 : index
    %4 = vector.load %arg4[%c0_3, %c0_4] : memref<1x64xf32, #tpu.memory_space<vmem>>, vector<1x64xf32>
    %5 = vector.broadcast %4 : vector<1x64xf32> to vector<8x64xf32>
    %6 = arith.addf %3, %5 : vector<8x64xf32>
    %cst_5 = arith.constant 0.000000e+00 : f32
    %7 = vector.broadcast %cst_5 : f32 to vector<8x64xf32>
    %8 = arith.maximumf %6, %7 : vector<8x64xf32>
    %9 = arith.truncf %8 : vector<8x64xf32> to vector<8x64xbf16>
    %c0_6 = arith.constant 0 : index
    %c0_7 = arith.constant 0 : index
    %10 = vector.load %arg5[%c0_6, %c0_7] : memref<64x32xbf16, #tpu.memory_space<vmem>>, vector<64x32xbf16>
    %cst_8 = arith.constant dense<0.000000e+00> : vector<8x32xf32>
    %11 = tpu.matmul %9, %10, %cst_8 {dimension_numbers = #tpu.dot_dimension_numbers<[1], [0], [0], [1], [0, 0, 1, 1], [], []>} : vector<8x64xbf16>, vector<64x32xbf16>, vector<8x32xf32> -> vector<8x32xf32>
    %c0_9 = arith.constant 0 : index
    %c0_10 = arith.constant 0 : index
    %12 = vector.load %arg6[%c0_9, %c0_10] : memref<1x32xf32, #tpu.memory_space<vmem>>, vector<1x32xf32>
    %13 = vector.broadcast %12 : vector<1x32xf32> to vector<8x32xf32>
    %14 = arith.addf %11, %13 : vector<8x32xf32>
    %c0_11 = arith.constant 0 : index
    %c0_12 = arith.constant 0 : index
    %15 = vector.load %arg2[%c0_11, %c0_12] : memref<8x32xf32, #tpu.memory_space<vmem>>, vector<8x32xf32>
    %16 = arith.addf %14, %15 : vector<8x32xf32>
    %cst_13 = arith.constant dense<0.000000e+00> : vector<8xf32>
    %17 = vector.multi_reduction <add>, %16, %cst_13 [1] : vector<8x32xf32> to vector<8xf32>
    %18 = vector.shape_cast %17 : vector<8xf32> to vector<8x1xf32>
    %cst_14 = arith.constant 3.200000e+01 : f32
    %19 = vector.broadcast %cst_14 : f32 to vector<8x1xf32>
    %20 = arith.divf %18, %19 : vector<8x1xf32>
    %21 = vector.broadcast %20 : vector<8x1xf32> to vector<8x32xf32>
    %22 = arith.subf %16, %21 : vector<8x32xf32>
    %23 = arith.mulf %22, %22 : vector<8x32xf32>
    %cst_15 = arith.constant dense<0.000000e+00> : vector<8xf32>
    %24 = vector.multi_reduction <add>, %23, %cst_15 [1] : vector<8x32xf32> to vector<8xf32>
    %25 = vector.shape_cast %24 : vector<8xf32> to vector<8x1xf32>
    %cst_16 = arith.constant 3.200000e+01 : f32
    %26 = vector.broadcast %cst_16 : f32 to vector<8x1xf32>
    %27 = arith.divf %25, %26 : vector<8x1xf32>
    %cst_17 = arith.constant 9.99999997E-7 : f32
    %28 = vector.broadcast %cst_17 : f32 to vector<8x1xf32>
    %29 = arith.addf %27, %28 : vector<8x1xf32>
    %30 = math.rsqrt %29 : vector<8x1xf32>
    %31 = vector.broadcast %30 : vector<8x1xf32> to vector<8x32xf32>
    %32 = arith.mulf %22, %31 : vector<8x32xf32>
    %c0_18 = arith.constant 0 : index
    %c0_19 = arith.constant 0 : index
    %33 = vector.load %arg7[%c0_18, %c0_19] : memref<1x32xf32, #tpu.memory_space<vmem>>, vector<1x32xf32>
    %34 = vector.broadcast %33 : vector<1x32xf32> to vector<8x32xf32>
    %35 = arith.mulf %32, %34 : vector<8x32xf32>
    %c0_20 = arith.constant 0 : index
    %c0_21 = arith.constant 0 : index
    %36 = vector.load %arg8[%c0_20, %c0_21] : memref<1x32xf32, #tpu.memory_space<vmem>>, vector<1x32xf32>
    %37 = vector.broadcast %36 : vector<1x32xf32> to vector<8x32xf32>
    %38 = arith.addf %35, %37 : vector<8x32xf32>
    %c0_22 = arith.constant 0 : index
    %c0_23 = arith.constant 0 : index
    %39 = vector.load %arg9[%c0_22, %c0_23] : memref<8x32xf32, #tpu.memory_space<vmem>>, vector<8x32xf32>
    tpu.vector_store %arg9[%c0_22, %c0_23], %38 {strides = array<i32>} : memref<8x32xf32, #tpu.memory_space<vmem>>, vector<8x32xf32>,
    return
  }
  func.func @transform_0(%arg0: i32) -> (i32, i32) {
    %c0_i32 = arith.constant 0 : i32
    %c0_i32_0 = arith.constant 0 : i32
    return %arg0, %c0_i32 : i32, i32
  }
  func.func @transform_1(%arg0: i32) -> (i32, i32) {
    %c0_i32 = arith.constant 0 : i32
    %c0_i32_0 = arith.constant 0 : i32
    return %arg0, %c0_i32 : i32, i32
  }
  func.func @transform_2(%arg0: i32) -> (i32, i32) {
    %c0_i32 = arith.constant 0 : i32
    %c0_i32_0 = arith.constant 0 : i32
    %c0_i32_1 = arith.constant 0 : i32
    return %c0_i32, %c0_i32_0 : i32, i32
  }
  func.func @transform_3(%arg0: i32) -> (i32, i32) {
    %c0_i32 = arith.constant 0 : i32
    %c0_i32_0 = arith.constant 0 : i32
    %c0_i32_1 = arith.constant 0 : i32
    return %c0_i32, %c0_i32_0 : i32, i32
  }
  func.func @transform_4(%arg0: i32) -> (i32, i32) {
    %c0_i32 = arith.constant 0 : i32
    %c0_i32_0 = arith.constant 0 : i32
    %c0_i32_1 = arith.constant 0 : i32
    return %c0_i32, %c0_i32_0 : i32, i32
  }
  func.func @transform_5(%arg0: i32) -> (i32, i32) {
    %c0_i32 = arith.constant 0 : i32
    %c0_i32_0 = arith.constant 0 : i32
    %c0_i32_1 = arith.constant 0 : i32
    return %c0_i32, %c0_i32_0 : i32, i32
  }
  func.func @transform_6(%arg0: i32) -> (i32, i32) {
    %c0_i32 = arith.constant 0 : i32
    %c0_i32_0 = arith.constant 0 : i32
    %c0_i32_1 = arith.constant 0 : i32
    return %c0_i32, %c0_i32_0 : i32, i32
  }
  func.func @transform_7(%arg0: i32) -> (i32, i32) {
    %c0_i32 = arith.constant 0 : i32
    %c0_i32_0 = arith.constant 0 : i32
    %c0_i32_1 = arith.constant 0 : i32
    return %c0_i32, %c0_i32_0 : i32, i32
  }
  func.func @transform_8(%arg0: i32) -> (i32, i32) {
    %c0_i32 = arith.constant 0 : i32
    %c0_i32_0 = arith.constant 0 : i32
    return %arg0, %c0_i32 : i32, i32
  }
}

</mosaic_0001>

<bundles_post_ra>
// kernel: tpu_custom_call.1
= control target key start
LH: loop header
LB: loop body
LE: loop exit
PB: predicated region body
PF: predicated region fallthrough
CT: control target
= control target key end

     0   :  { %13 = vsyncpa [#allocation3], 0  ;;  %s865_s0 = inlined_call_operand.vmem [shape: f32[16,32], index: 0, kind: input, shape index: {}]   ;;  %s866_s1 = inlined_call_operand.vmem [shape: f32[16,32], index: 1, kind: input, shape index: {}]   ;;  %s867_s2 = inlined_call_operand.vmem [shape: bf16[32,64], index: 2, kind: input, shape index: {}]   ;;  %s868_s3 = inlined_call_operand.vmem [shape: f32[1,64], index: 3, kind: input, shape index: {}]   ;;  %s869_s4 = inlined_call_operand.vmem [shape: bf16[64,32], index: 4, kind: input, shape index: {}]   ;;  %s870_s5 = inlined_call_operand.vmem [shape: f32[1,32], index: 5, kind: input, shape index: {}]   ;;  %s871_s6 = inlined_call_operand.vmem [shape: f32[1,32], index: 6, kind: input, shape index: {}]   ;;  %s872_s7 = inlined_call_operand.vmem [shape: f32[1,32], index: 7, kind: input, shape index: {}]   ;;  %s873_s8 = inlined_call_operand.hbm [shape: f32[16,32], index: 8, kind: output, shape index: {}]  }
   0x1   :  { %15 = vsyncpa [#allocation3 + $0x1], 0  ;;  %s743_s27 = smov 0   ;;  %s745_s28 = smov 0  }
   0x2   :  { %s747_s29 = smov 0   ;;  %s749_s30 = smov 0  }
   0x3 LB: > { %s764_s9 = sadd.s32 4294967295, %s695_s30   ;;  %s542_s10 = sadd.s32 4294967294, %s695_s30   ;;  %s695_s30 = sphi %s749_s30, %s879_s30   ;;  %s691_s29 = sphi %s747_s29, %s878_s29   ;;  %s687_s28 = sphi %s745_s28, %s877_s28   ;;  %s683_s27 = sphi %s743_s27, %s876_s27  }
   0x4   : > { %s768_s11 = sadd.s32 1, %s695_s30   ;;  %s206_s12 = sadd.s32 1, %s691_s29 }
   0x5   : > { %s203_s13 = ssub.s32 %s695_s30, %s768_s11  ;;  %p216_p0 = scmp.ne.s32.totalorder %s691_s29, %s687_s28 }
   0x6   : > { %p204_p1 = scmp.eq.s32.totalorder %s203_s13, 0  ;;  %p217_p2 = scmp.eq.s32.totalorder %s764_s9, 1 }
   0x7   : > { %p222_p3 = scmp.ne.s32.totalorder %s687_s28, %s683_s27  ;;  %p223_p4 = scmp.eq.s32.totalorder %s542_s10, 1 }
   0x8   : > { %s779_s14 = scalar_select %p204_p1, %s691_s29, %s206_s12  }
   0x9   : > { %p781_p5 = por %p217_p2, %p216_p0  ;;  %p785_p6 = por %p223_p4, %p222_p3 }
   0xa   : > { %p545_p7 = scmp.ge.s32.totalorder %s695_s30, 1  ;;  %p273_p8 = scmp.lt.s32.totalorder %s695_s30, 3 }
   0xc   : > { %p274_p9 = pnand %p545_p7, %p273_p8 }
   0xd   : > { %p310_p10 = scmp.lt.s32.totalorder (!%p274_p9), %s764_s9, 1  ;;  %s576_s17 = sshll.u32 (!%p274_p9), %s764_s9, 3 }
   0xe   : > { %277 = sbr.rel (%p274_p9) target bundleno = 560 (0x230), region = 52  ;;  %s466_s22 = scalar_lea.hbm (!%p274_p9), %s873_s8, %s576_s17 }
   0xf   : > { %s470_s10 = sshll.u32 (!%p274_p9), %s466_s22, 4  ;;  %s471_s10 = int_to_ptr.hbm [resolvable:$true] %s470_s10 }
  0x10   : > { %s647_s18 = sshra.s32 (!%p274_p9), %s471_s10, 4  ;;  %s648_s18 = int_to_ptr.hbm [resolvable:$true] %s647_s18 }
  0x11   : > { %s649_s17 = scalar_lea.hbm (!%p274_p9), %s648_s18, 8  ;;  %p654_p0 = scmp.lt.s32.totalorder (!%p274_p9), %s648_s18, %s873_s8 }
  0x12   : > { %p650_p11 = scmp.ne.s32.totalorder (!%p274_p9), %s648_s18, %s649_s17 }
  0x13   : > { %v580_v0 = vld [vmem:[%s867_s2 + $0x8] sm:$0xff]  ;;  %v584_v1 = vld [vmem:[%s869_s4 + $0x18] sm:$0xff]  ;;  %v579_v2 = vld [vmem:[%s867_s2] sm:$0xff]  ;;  %s311_s23 = scalar_select %p310_p10, %s764_s9, 1  ;;  %vm341_vm0 = vcmask 261120   ;;  %vm396_vm1 = vcmask 523264  }
  0x14   : > { %351 = vmatpush.bf16.msra.mxu0 %v580_v0  ;;  %404 = vmatpush.bf16.msra.mxu1 %v584_v1  ;;  %v583_v3 = vld [vmem:[%s869_s4 + $0x10] sm:$0xff]  ;;  %v582_v6 = vld [vmem:[%s869_s4 + $0x8] sm:$0xff]  ;;  %v581_v7 = vld [vmem:[%s869_s4] sm:$0xff]  ;;  %v697_v21 = vmov 32.0   ;;  %p651_p12 = pnand %p650_p11, %p781_p5 }
  0x15   : > { %s547_s26 = sshll.u32 %s311_s23, 3  ;;  %v625_v8 = vld [vmem:[%s868_s3] ss:$0 sm:$0xff]  ;;  %629 = vrcp.f32 %v697_v21 }
  0x16   : > { %s313_s13 = scalar_lea.vmem %s865_s0, %s547_s26  ;;  %v626_v14 = vld [vmem:[%s870_s5] ss:$0 sm:$0xff]  ;;  %s317_s12 = scalar_lea.vmem %s866_s1, %s547_s26 }
  0x17   : > { %v319_v4 = vld [vmem:[%s313_s13] sm:$0xff]  ;;  %s307_s26 = sand.u32 1, %s687_s28   ;;  %p652_p13 = pneg %p651_p12 }
  0x18   : > { %352 = vmatpush.bf16.msra.mxu0 %v579_v2  ;;  %405 = vmatpush.bf16.msra.mxu1 %v583_v3  ;;  %v320_v5 = vpack.c.bf16 %v319_v4, %v319_v4  ;;  %v413_v16 = vld [vmem:[%s317_s12] sm:$0xff]  ;;  %s546_s13 = sshll.u32 %s307_s26, 3  ;;  %s456_s12 = scalar_lea.sflag [#allocation3], %s307_s26 }
  0x19   : > { %v627_v42 = vld [vmem:[%s871_s6] ss:$0 sm:$0xff]  ;;  %s309_s25 = scalar_lea.vmem [#allocation2], %s546_s13  ;;  %s653_s13 = scalar_lea.hbm %s873_s8, 16 }
  0x1a   : > { %v628_v45 = vld [vmem:[%s872_s7] ss:$0 sm:$0xff]  ;;  %s468_s9 = sshll.u32 %s309_s25, 4  ;;  %p655_p1 = scmp.lt.s32.totalorder %s653_s13, %s649_s17  ;;  %s469_s9 = int_to_ptr.vmem [resolvable:$true] %s468_s9 }
  0x1b   : > { %557 = vmatmul.msk.bf16.vlgmr.msra.gmra.mxu0 %vm341_vm0, %v320_v5  ;;  %v630_v22 = vpop.eup %629 }
  0x1c   : > { %406 = vmatpush.bf16.msra.mxu1 %v582_v6  ;;  %v419_v23 = vmul.f32 32.0, %v630_v22  ;;  %vm423_vm2 = vweird.f32 %v630_v22  ;;  %p656_p2 = por %p655_p1, %p654_p0 }
  0x1e   : > { %v420_v24 = vsub.f32 1.0, %v419_v23  ;;  %p657_p3 = pnand %p656_p2, %p652_p13 }
  0x20   : > { %407 = vmatpush.bf16.msra.mxu1 %v581_v7  ;;  %v421_v25 = vmul.f32 %v630_v22, %v420_v24 }
  0x22   : > { %v422_v26 = vadd.f32 %v630_v22, %v421_v25 }
  0x24   : > { %v424_v27 = vsel %vm423_vm2, %v630_v22, %v422_v26 }
  0x98   : > { %v354_v9 = vpop.f32.mrf.mxu0 }
  0x99   : > { %v355_v10 = vadd.f32 %v625_v8, %v354_v9 }
  0x9b   : > { %v358_v11 = vmax.f32 %v355_v10, 0.0 }
  0x9d   : > { %v359_v12 = vpack.c.bf16 %v358_v11, %v358_v11 }
  0x9f   : > { %574 = vmatmul.msk.bf16.vlgmr.msra.gmra.mxu1 %vm396_vm1, %v359_v12 }
  0xa0   : > { %v356_v13 = vpop.f32.mrf.mxu0 }
 0x11c   : > { %v409_v15 = vpop.f32.mrf.mxu1 }
 0x11d   : > { %v410_v17 = vadd.f32 %v626_v14, %v409_v15 }
 0x11f   : > { %v414_v18 = vadd.f32 %v413_v16, %v410_v17 }
 0x121   : > { %v415_v19 = vsel %vm341_vm0, %v414_v18, 0.0 }
 0x122   : > { %416 = vadd.xlane.f32.xlu0 %v415_v19 }
 0x124   : > { %v411_v20 = vpop.f32.mrf.mxu1 }
 0x195   : > { %v417_v28 = vpop.xlane.xlu0 %416 }
 0x196   : > { %v425_v29 = vmul.f32 %v424_v27, %v417_v28 }
 0x198   : > { %v426_v30 = vsub.f32 %v414_v18, %v425_v29 }
 0x19a   : > { %v427_v31 = vmul.f32 %v426_v30, %v426_v30 }
 0x19c   : > { %v428_v32 = vsel %vm341_vm0, %v427_v31, 0.0 }
 0x19d   : > { %429 = vadd.xlane.f32.xlu0 %v428_v32 }
 0x210   : > { %v430_v33 = vpop.xlane.xlu0 %429 }
 0x211   : > { %v431_v34 = vmul.f32 %v430_v33, %v424_v27 }
 0x213   : > { %v432_v35 = vadd.f32 1e-06, %v431_v34 }
 0x215   : > { %631 = vrsqrt.f32 %v432_v35  ;;  %vm439_vm4 = vweird.f32 %v432_v35 }
 0x21b   : > { %v632_v36 = vpop.eup %631 }
 0x21c   : > { %v434_v37 = vmul.f32 %v632_v36, %v432_v35  ;;  %vm440_vm3 = vweird.f32 %v632_v36 }
 0x21d   : > { %vm441_vm5 = vmor %vm439_vm4, %vm440_vm3 }
 0x21e   : > { %v435_v38 = vmul.f32 %v632_v36, %v434_v37 }
 0x220   : > { %v436_v39 = vmul.f32 0.5, %v435_v38 }
 0x222   : > { %v437_v40 = vsub.f32 1.5, %v436_v39 }
 0x224   : > { %v438_v41 = vmul.f32 %v632_v36, %v437_v40 }
 0x226   : > { %v442_v43 = vsel %vm441_vm5, %v632_v36, %v438_v41 }
 0x227   : > { %v443_v44 = vmul.f32 %v442_v43, %v426_v30 }
 0x229   : > { %v448_v46 = vmul.f32 %v627_v42, %v443_v44 }
 0x22b   : > { %v453_v47 = vadd.f32 %v628_v45, %v448_v46 }
 0x22d   : > { %454 = vst.msk [vmem:[%s309_s25] sm:$0xff] %vm341_vm0, %v453_v47 }
 0x22e   : > { %660 = shalt.err (!%p657_p3)
}
 0x22f   : > { %585 = dma.vmem_to_hbm [thread:$0]  (%p781_p5), %s469_s9, 128, %s471_s10, %s456_s12  }
 0x230 PF: > { %p591_p4 = scmp.ge.s32.totalorder %s695_s30, 2  ;;  %s482_s26 = sand.u32 1, %s683_s27  }
 0x231   : > { %s483_s23 = scalar_lea.sflag [#allocation3], %s482_s26 }
 0x232   : > { %p588_p7 = pnand %p591_p4, %p785_p6 }
 0x234   : > { %p589_p8 = pneg %p588_p7 }
 0x236   : > { %678 = dma.done.wait (%p589_p8), %s483_s23, 128  }
 0x237   : > { %680 = vsyncadd (%p589_p8), %s483_s23, 4294967168  ;;  %p18_p9 = scmp.ge.s32.totalorder %s768_s11, 4   ;;  %s876_s27 = smov %s687_s28 }
 0x238   : > { %s877_s28 = smov %s691_s29  ;;  %s878_s29 = smov %s779_s14 }
 0x239   : > { %s879_s30 = smov %s768_s11  ;;  %20 = sbr.rel (!%p18_p9) target bundleno = 3 (0x3), region = 90 }
 0x23e   :  { %489 = vsyncpa [#allocation3], 1 }
 0x23f   :  { %491 = vsyncpa [#allocation3 + $0x1], 1 }

</bundles_post_ra>
